<compile_context>
chip_gen: v7x
topology: tpu7x:2x2x1
jax: 0.10.0
libtpu: 0.0.40
codegen_flags: <defaults>
</compile_context>

<pallas_src>
import functools

import jax
import jax.numpy as jnp
from jax.experimental import pallas as pl
from jax.experimental.pallas import tpu as pltpu


# ---------------------------------------------------------------------------
# Kernel 1: streaming per-example sum-of-squares of the gradient (partial).
# ---------------------------------------------------------------------------
def _ssq_partial_kernel(grads_ref, psum_ref, *, tile_d, acc_lanes, d_total,
                        n_valid_tiles, guard_phantom):
    c = pl.program_id(0)                    # D-range split ("parallel" -> v7x TCs)
    k = pl.program_id(1)                    # tile within this split ("arbitrary")
    tiles_per_split = pl.num_programs(1)
    t = c * tiles_per_split + k             # global D-tile index

    @pl.when(k == 0)
    def _init():
        psum_ref[...] = jnp.zeros_like(psum_ref)

    def _accumulate():
        b = grads_ref.shape[0]
        n_sub = tile_d // acc_lanes
        needs_mask = (d_total % tile_d) != 0          # static Python bool
        if needs_mask:
            # Hoisted lane-index (JAX does not CSE broadcast_in_dim in loops).
            col0 = (jax.lax.broadcasted_iota(jnp.int32, (b, acc_lanes), 1)
                    + t * tile_d)

        def body(s, acc):
            start = pl.multiple_of(s * acc_lanes, acc_lanes)
            sl = grads_ref[:, pl.ds(start, acc_lanes)].astype(jnp.float32)
            if needs_mask:
                # Zero out columns >= D (boundary block is NOT zero-filled).
                sl = jnp.where(col0 + s * acc_lanes < d_total, sl, 0.0)
            return acc + sl * sl

        part = jax.lax.fori_loop(0, n_sub, body,
                                 jnp.zeros((b, acc_lanes), jnp.float32))
        psum_ref[...] += part

    if guard_phantom:
        # Odd tile counts: the last grid slot of the last split re-reads a
        # valid tile (clamped index_map) but must not contribute twice.
        pl.when(t < n_valid_tiles)(_accumulate)
    else:
        _accumulate()


# ---------------------------------------------------------------------------
# Kernel 2: tiny epilogue - norm, difficulty, stable rank, weights, mean loss.
# ---------------------------------------------------------------------------
def _spl_epilogue_kernel(params_ref, loss_ref, ssq_ref, mean_ref, diff_ref):
    a_coef = params_ref[0]
    b_coef = params_ref[1]
    weight_first = params_ref[2]
    batch_step_size = params_ref[3]

    loss = loss_ref[...]                                     # (B, 1) f32
    b = loss.shape[0]

    # compute_gradients_length (channel=False): per-example L2 norm.
    ssq = jnp.sum(ssq_ref[...], axis=-1, keepdims=True)      # (B, 1)
    gnorm = jnp.sqrt(ssq)

    # example_difficulty = a*loss + b*grad_norm
    diff_col = a_coef * loss + b_coef * gnorm                # (B, 1)

    # Lane-dense difficulty row WITHOUT an XLU transpose: broadcast along
    # lanes, keep the diagonal, reduce over sublanes (O(B) data moved).
    d_i = jnp.broadcast_to(diff_col, (b, b))                 # d_i[i, j] = d[i]
    i_idx = jax.lax.broadcasted_iota(jnp.int32, (b, b), 0)
    j_idx = jax.lax.broadcasted_iota(jnp.int32, (b, b), 1)
    diff_row = jnp.sum(jnp.where(i_idx == j_idx, d_i, 0.0),
                       axis=0, keepdims=True)                # (1, B): d[j] on lanes
    d_j = jnp.broadcast_to(diff_row, (b, b))                 # d_j[i, j] = d[j]

    # Index-stable rank == stable argsort + scatter (torch argsort is not
    # guaranteed stable, so exact ties may order differently).  f32 count is
    # exact for any realistic B.
    smaller = (d_j < d_i) | ((d_j == d_i) & (j_idx < i_idx))
    rank = jnp.sum(smaller.astype(jnp.float32), axis=-1, keepdims=True)  # (B, 1)

    # Rank-linear weights and weighted mean loss.
    weight = weight_first - batch_step_size * rank           # (B, 1)
    weighted = loss * weight
    mean_ref[...] = jnp.sum(weighted, axis=0, keepdims=True) * (1.0 / b)  # (1, 1)
    diff_ref[...] = diff_row                                 # (1, B)


# ---------------------------------------------------------------------------
# Wrapper
# ---------------------------------------------------------------------------
def _per_buffer_budget_bytes():
    """Generation-aware per-DMA-buffer budget (review item 3)."""
    try:
        kind = jax.devices()[0].device_kind.lower()
    except Exception:
        return 8 * 1024 * 1024
    if "v5 lite" in kind or "v5e" in kind or "v5lite" in kind:
        return 6 * 1024 * 1024
    return 8 * 1024 * 1024


def _choose_tile_d(B, D, itemsize, max_bytes_per_buf):
    """Largest lane-aligned D tile whose double-buffered DMA fits the budget."""
    max_tile = max(128, (max_bytes_per_buf // (B * itemsize)) // 128 * 128)
    d_aligned = pl.cdiv(D, 128) * 128
    return min(d_aligned, max_tile)


def _acc_lanes_for(tile_d):
    """Accumulator / inner-step width: widest power-of-two multiple of 128
    (<=1024) dividing tile_d, to amortize fori_loop overhead."""
    for w in (1024, 512, 256):
        if tile_d % w == 0:
            return w
    return 128


def symmetric_spl_forward(loss, gradients, difficulty_type, *,
                          max_epoch, current_epoch, tile_d=None, num_splits=2):
    """Pallas implementation of SymmetricSelfPacedLearning.forward.

    Returns (mean weighted loss, example_difficulty[B])."""
    B = int(loss.shape[0])

    # __init__ scalar setup (runtime scalars ride in SMEM -> one compile/shape).
    epoch_step_size = 2.0 / (max_epoch - 1)
    weight_first = 2.0 - current_epoch * epoch_step_size
    weight_last = 2.0 - weight_first
    # NOTE: PyTorch divides by zero for B == 1; guarded here with 0.
    batch_step_size = (weight_first - weight_last) / (B - 1) if B > 1 else 0.0

    if difficulty_type == 'loss':
        a_coef, b_coef = 1.0, 0.0
    elif difficulty_type == 'gradients':
        a_coef, b_coef = 0.0, 1.0
    elif difficulty_type == 'LGDM':
        a_coef, b_coef = 0.5, 0.5
    else:
        raise NotImplementedError(difficulty_type)

    params = jnp.array([a_coef, b_coef, weight_first, batch_step_size],
                       dtype=jnp.float32)

    # Gradients stay in their native dtype (bf16 stays bf16 in HBM); the f32
    # cast happens per-slice inside the kernel.  NO padding pass over HBM.
    g_flat = gradients.reshape(B, -1)
    D = int(g_flat.shape[1])
    loss_col = loss.reshape(B, 1).astype(jnp.float32)
    itemsize = g_flat.dtype.itemsize

    if tile_d is None:
        tile_d = _choose_tile_d(B, D, itemsize, _per_buffer_budget_bytes())
    else:
        tile_d = max(128, pl.cdiv(int(tile_d), 128) * 128)
    acc_lanes = _acc_lanes_for(tile_d)

    n_tiles = pl.cdiv(D, tile_d)
    n_splits = num_splits if n_tiles >= num_splits else 1
    tiles_per_split = pl.cdiv(n_tiles, n_splits)
    has_phantom = n_splits * tiles_per_split > n_tiles

    if has_phantom:
        def grad_index_map(c, k):
            # Clamp the (at most one) phantom slot onto a valid tile; its
            # contribution is suppressed in-kernel via pl.when.
            return (0, jnp.minimum(c * tiles_per_split + k, n_tiles - 1))
    else:
        def grad_index_map(c, k):
            return (0, c * tiles_per_split + k)

    tile_bytes = B * tile_d * itemsize
    vmem_limit = int(min(32 << 20, max(16 << 20, 2 * tile_bytes + (4 << 20))))

    kern1 = functools.partial(
        _ssq_partial_kernel, tile_d=tile_d, acc_lanes=acc_lanes, d_total=D,
        n_valid_tiles=n_tiles, guard_phantom=has_phantom)

    psum = pl.pallas_call(
        kern1,
        out_shape=jax.ShapeDtypeStruct((n_splits, B, acc_lanes), jnp.float32),
        grid=(n_splits, tiles_per_split),
        in_specs=[pl.BlockSpec((B, tile_d), grad_index_map)],
        out_specs=pl.BlockSpec((None, B, acc_lanes), lambda c, k: (c, 0, 0)),
        compiler_params=pltpu.CompilerParams(
            dimension_semantics=("parallel", "arbitrary"),
            vmem_limit_bytes=vmem_limit),
        cost_estimate=pl.CostEstimate(
            flops=int(3 * B * D),
            transcendentals=0,
            bytes_accessed=int(B * D * itemsize
                               + n_splits * B * acc_lanes * 4)),
    )(g_flat)

    # Combine the per-split lane-wise partials (tiny; plain XLA).
    ssq_lanes = jnp.sum(psum, axis=0)                        # (B, acc_lanes) f32

    mean_out, diff_out = pl.pallas_call(
        _spl_epilogue_kernel,
        out_shape=(jax.ShapeDtypeStruct((1, 1), jnp.float32),
                   jax.ShapeDtypeStruct((1, B), jnp.float32)),
        in_specs=[
            pl.BlockSpec(memory_space=pltpu.MemorySpace.SMEM),   # params (4,)
            pl.BlockSpec(memory_space=pltpu.MemorySpace.VMEM),   # loss (B, 1)
            pl.BlockSpec(memory_space=pltpu.MemorySpace.VMEM),   # ssq (B, acc_lanes)
        ],
        out_specs=(pl.BlockSpec(memory_space=pltpu.MemorySpace.VMEM),
                   pl.BlockSpec(memory_space=pltpu.MemorySpace.VMEM)),
        cost_estimate=pl.CostEstimate(
            flops=int(6 * B * B),
            transcendentals=int(B),
            bytes_accessed=int((B * acc_lanes + 3 * B + 5) * 4)),
    )(params, loss_col, ssq_lanes)

    return mean_out[0, 0], diff_out[0, :]


# ---------------------------------------------------------------------------
# Pure-JAX reference mirroring the PyTorch module (for verification).
# ---------------------------------------------------------------------------
def _reference(loss, gradients, difficulty_type, *, max_epoch, current_epoch):
    B = loss.shape[0]
    g32 = gradients.reshape(B, -1).astype(jnp.float32)
    gnorm = jnp.sqrt(jnp.sum(g32 ** 2, axis=-1))
    if difficulty_type == 'loss':
        d = loss
    elif difficulty_type == 'gradients':
        d = gnorm
    elif difficulty_type == 'LGDM':
        d = 0.5 * loss + 0.5 * gnorm
    else:
        raise NotImplementedError(difficulty_type)
    epoch_step = 2.0 / (max_epoch - 1)
    wf = 2.0 - current_epoch * epoch_step
    wl = 2.0 - wf
    bstep = (wf - wl) / (B - 1)
    order = jnp.argsort(d)
    w = jnp.zeros_like(d).at[order].set(
        wf - bstep * jnp.arange(B, dtype=d.dtype))
    return jnp.mean(loss * w), d


if __name__ == "__main__":
    MAX_EPOCH, CURRENT_EPOCH = 10, 3
    key = jax.random.PRNGKey(0)
    k1, k2, k3, k4, k5, k6 = jax.random.split(key, 6)

    # --- Test 1: f32, LGDM, forced multi-tile + 2-way parallel D split. -----
    B, C, H, W = 8, 4, 16, 16                                # D = 1024
    loss = jax.random.uniform(k1, (B,), dtype=jnp.float32)
    grads = jax.random.normal(k2, (B, C, H, W), dtype=jnp.float32)
    m, d = symmetric_spl_forward(loss, grads, 'LGDM',
                                 max_epoch=MAX_EPOCH,
                                 current_epoch=CURRENT_EPOCH,
                                 tile_d=256)                 # 4 tiles -> 2 per split
    jax.block_until_ready((m, d))
    rm, rd = _reference(loss, grads, 'LGDM',
                        max_epoch=MAX_EPOCH, current_epoch=CURRENT_EPOCH)
    assert bool(jnp.allclose(m, rm, rtol=1e-5, atol=1e-5))
    assert bool(jnp.allclose(d, rd, rtol=1e-5, atol=1e-5))

    # --- Test 2: bf16 gradients, ragged D (400) -> in-kernel tail mask. -----
    B2, C2, H2, W2 = 8, 4, 10, 10                            # D = 400
    loss2 = jax.random.uniform(k3, (B2,), dtype=jnp.float32)
    grads2 = jax.random.normal(k4, (B2, C2, H2, W2),
                               dtype=jnp.float32).astype(jnp.bfloat16)
    m2, d2 = symmetric_spl_forward(loss2, grads2, 'gradients',
                                   max_epoch=MAX_EPOCH,
                                   current_epoch=CURRENT_EPOCH)
    jax.block_until_ready((m2, d2))
    rm2, rd2 = _reference(loss2, grads2, 'gradients',
                          max_epoch=MAX_EPOCH, current_epoch=CURRENT_EPOCH)
    assert bool(jnp.allclose(m2, rm2, rtol=1e-4, atol=1e-4))
    assert bool(jnp.allclose(d2, rd2, rtol=1e-4, atol=1e-4))

    # --- Test 3: 'loss' difficulty type, default (single-tile) path. --------
    m3, d3 = symmetric_spl_forward(loss, grads, 'loss',
                                   max_epoch=MAX_EPOCH,
                                   current_epoch=CURRENT_EPOCH)
    jax.block_until_ready((m3, d3))
    rm3, rd3 = _reference(loss, grads, 'loss',
                          max_epoch=MAX_EPOCH, current_epoch=CURRENT_EPOCH)
    assert bool(jnp.allclose(m3, rm3, rtol=1e-5, atol=1e-5))
    assert bool(jnp.allclose(d3, rd3, rtol=1e-5, atol=1e-5))

    # --- Test 4: odd tile count (phantom slot), multi-step inner loop, mask.
    B4 = 8
    loss4 = jax.random.uniform(k5, (B4,), dtype=jnp.float32)
    grads4 = jax.random.normal(k6, (B4, 5, 1000), dtype=jnp.float32)  # D = 5000
    m4, d4 = symmetric_spl_forward(loss4, grads4, 'LGDM',
                                   max_epoch=MAX_EPOCH,
                                   current_epoch=CURRENT_EPOCH,
                                   tile_d=2048)              # 3 tiles, acc_lanes=1024
    jax.block_until_ready((m4, d4))
    rm4, rd4 = _reference(loss4, grads4, 'LGDM',
                          max_epoch=MAX_EPOCH, current_epoch=CURRENT_EPOCH)
    assert bool(jnp.allclose(m4, rm4, rtol=1e-5, atol=1e-5))
    assert bool(jnp.allclose(d4, rd4, rtol=1e-5, atol=1e-5))

    print("KERNEL_OK")
</pallas_src>

<mosaic_0001>
module attributes {stable_mosaic.version = 11 : i64} {
  func.func @_ssq_partial_kernel(%arg0: i32, %arg1: i32, %arg2: memref<8x256xf32, #tpu.memory_space<vmem>>, %arg3: memref<1x8x256xf32, #tpu.memory_space<vmem>>) attributes {dimension_semantics = [#tpu.dimension_semantics<parallel>, #tpu.dimension_semantics<arbitrary>], iteration_bounds = array<i64: 2, 2>, scalar_prefetch = 0 : i64, scratch_operands = 0 : i64, tpu.core_type = #tpu.core_type<tc>, window_params = [{transform_indices = @transform_0, window_bounds = array<i64: 8, 256>}, {transform_indices = @transform_1, window_bounds = array<i64: 1, 8, 256>}]} {
    %c0_i32 = arith.constant 0 : i32
    %0 = arith.cmpi eq, %arg1, %c0_i32 : i32
    %1 = arith.extui %0 : i1 to i32
    %c0_i32_0 = arith.constant 0 : i32
    %2 = arith.cmpi ne, %1, %c0_i32_0 : i32
    scf.if %2 {
      %cst_8 = arith.constant 0.000000e+00 : f32
      %16 = vector.broadcast %cst_8 : f32 to vector<8x256xf32>
      %c0_9 = arith.constant 0 : index
      %c0_10 = arith.constant 0 : index
      %c0_11 = arith.constant 0 : index
      %17 = vector.load %arg3[%c0_9, %c0_10, %c0_11] : memref<1x8x256xf32, #tpu.memory_space<vmem>>, vector<1x8x256xf32>
      %18 = vector.shape_cast %17 : vector<1x8x256xf32> to vector<8x256xf32>
      %19 = vector.shape_cast %16 : vector<8x256xf32> to vector<1x8x256xf32>
      tpu.vector_store %arg3[%c0_9, %c0_10, %c0_11], %19 {strides = array<i32>} : memref<1x8x256xf32, #tpu.memory_space<vmem>>, vector<1x8x256xf32>,
    } else {
    }
    %cst = arith.constant 0.000000e+00 : f32
    %3 = vector.broadcast %cst : f32 to vector<8x256xf32>
    %c0_i32_1 = arith.constant 0 : i32
    %c256_i32 = arith.constant 256 : i32
    %4 = arith.muli %c0_i32_1, %c256_i32 : i32
    %5 = tpu.assume_multiple %4, 256 : i32
    %c0 = arith.constant 0 : index
    %6 = arith.index_cast %5 : i32 to index
    %7 = vector.load %arg2[%c0, %6] : memref<8x256xf32, #tpu.memory_space<vmem>>, vector<8x256xf32>
    %8 = arith.mulf %7, %7 : vector<8x256xf32>
    %9 = arith.addf %3, %8 : vector<8x256xf32>
    %c1_i32 = arith.constant 1 : i32
    %c0_2 = arith.constant 0 : index
    %c0_3 = arith.constant 0 : index
    %c0_4 = arith.constant 0 : index
    %10 = vector.load %arg3[%c0_2, %c0_3, %c0_4] : memref<1x8x256xf32, #tpu.memory_space<vmem>>, vector<1x8x256xf32>
    %11 = vector.shape_cast %10 : vector<1x8x256xf32> to vector<8x256xf32>
    %12 = arith.addf %11, %9 : vector<8x256xf32>
    %c0_5 = arith.constant 0 : index
    %c0_6 = arith.constant 0 : index
    %c0_7 = arith.constant 0 : index
    %13 = vector.load %arg3[%c0_5, %c0_6, %c0_7] : memref<1x8x256xf32, #tpu.memory_space<vmem>>, vector<1x8x256xf32>
    %14 = vector.shape_cast %13 : vector<1x8x256xf32> to vector<8x256xf32>
    %15 = vector.shape_cast %12 : vector<8x256xf32> to vector<1x8x256xf32>
    tpu.vector_store %arg3[%c0_5, %c0_6, %c0_7], %15 {strides = array<i32>} : memref<1x8x256xf32, #tpu.memory_space<vmem>>, vector<1x8x256xf32>,
    return
  }
  func.func @transform_0(%arg0: i32, %arg1: i32) -> (i32, i32) {
    %c2_i32 = arith.constant 2 : i32
    %0 = arith.muli %arg0, %c2_i32 : i32
    %1 = arith.addi %0, %arg1 : i32
    %c0_i32 = arith.constant 0 : i32
    %c0_i32_0 = arith.constant 0 : i32
    return %c0_i32, %1 : i32, i32
  }
  func.func @transform_1(%arg0: i32, %arg1: i32) -> (i32, i32, i32) {
    %c0_i32 = arith.constant 0 : i32
    %c0_i32_0 = arith.constant 0 : i32
    %c0_i32_1 = arith.constant 0 : i32
    return %arg0, %c0_i32, %c0_i32_0 : i32, i32, i32
  }
}

</mosaic_0001>

<bundles_post_ra>
// kernel: tpu_custom_call.1
= control target key start
LH: loop header
LB: loop body
LE: loop exit
PB: predicated region body
PF: predicated region fallthrough
CT: control target
= control target key end

     0   :  { %6 = vsyncpa [#allocation3], 0  ;;  %s786_s0 = inlined_call_operand.hbm [shape: f32[8,1024], index: 0, kind: input, shape index: {}]   ;;  %s787_s1 = inlined_call_operand.hbm [shape: f32[2,8,256], index: 1, kind: output, shape index: {}]  }
   0x1   :  { %8 = vsyncpa [#allocation3 + $0x1], 0 }
   0x2   :  { %9 = vsyncpa [#allocation4], 0 }
   0x3   :  { %11 = vsyncpa [#allocation4 + $0x1], 0  ;;  %s561_s6 = smov 0   ;;  %s563_s7 = smov 0  }
   0x4   :  { %s565_s8 = smov 0   ;;  %s567_s9 = smov 0  }
   0x5   :  { %s569_s10 = smov 0   ;;  %s571_s11 = smov 0  }
   0x6   :  { %s573_s12 = smov 0   ;;  %s575_s13 = smov 0  }
   0x7   :  { %s577_s14 = smov 0   ;;  %s579_s15 = smov 0  }
   0x8   :  { %s581_s16 = smov 0  }
   0x9 LB: > { %s270_s17 = sadd.s32 4294967295, %s546_s16   ;;  %s271_s18 = sadd.s32 4294967294, %s546_s16   ;;  %s546_s16 = sphi %s581_s16, %s17_s16   ;;  %s542_s15 = sphi %s579_s15, %s807_s15   ;;  %s538_s14 = sphi %s577_s14, %s806_s14   ;;  %s534_s13 = sphi %s575_s13, %s805_s13   ;;  %s530_s12 = sphi %s573_s12, %s804_s12   ;;  %s526_s11 = sphi %s571_s11, %s803_s11   ;;  %s522_s10 = sphi %s569_s10, %s802_s10   ;;  %s518_s9 = sphi %s567_s9, %s801_s9   ;;  %s514_s8 = sphi %s565_s8, %s800_s8   ;;  %s510_s7 = sphi %s563_s7, %s799_s7   ;;  %s506_s6 = sphi %s561_s6, %s798_s6  }
   0xa   : > { %s26_s19 = sadd.s32 1, %s538_s14  ;;  %s29_s20 = sadd.s32 1, %s542_s15 }
   0xb   : > { %p27_p0 = scmp.ge.s32.totalorder %s26_s19, 2  ;;  %s272_s21 = sshll.u32 %s542_s15, 1 }
   0xc   : > { %s620_s22 = sadd.s32 %s538_s14, %s272_s21  ;;  %s40_s23 = sadd.s32 1, %s526_s11 }
   0xd   : > { %s809_s19 = smov (%p27_p0, %s26_s19), 0  ;;  %s811_s20 = smov (!%p27_p0, %s29_s20), %s542_s15 }
   0xe   : > { %p47_p1 = scmp.ne.s32.totalorder %s526_s11, %s522_s10  ;;  %p48_p2 = scmp.eq.s32.totalorder %s546_s16, 0 }
   0xf   : > { %p31_p3 = scmp.ge.s32.totalorder %s811_s20, 2  ;;  %p53_p4 = scmp.ne.s32.totalorder %s522_s10, %s518_s9 }
  0x10   : > { %p630_p5 = por %p48_p2, %p47_p1  ;;  %p54_p6 = scmp.eq.s32.totalorder %s270_s17, 0 }
  0x11   : > { %s813_s20 = smov (%p31_p3, %s811_s20), 0  ;;  %s66_s26 = sadd.s32 1, %s514_s8 }
  0x12   : > { %p636_p7 = por %p54_p6, %p53_p4  ;;  %s273_s27 = sshll.u32 %s813_s20, 1 }
  0x13   : > { %s63_s28 = ssub.s32 %s542_s15, %s813_s20  ;;  %s36_s29 = sadd.s32 %s273_s27, %s809_s19 }
  0x14   : > { %p64_p8 = scmp.eq.s32.totalorder %s63_s28, 0  ;;  %s37_s30 = ssub.s32 %s620_s22, %s36_s29 }
  0x15   : > { %p76_p9 = scmp.ne.s32.totalorder %s514_s8, %s510_s7  ;;  %p38_p10 = scmp.eq.s32.totalorder %s37_s30, 0 }
  0x16   : > { %p77_p11 = scmp.eq.s32.totalorder %s270_s17, 3  ;;  %p82_p13 = scmp.ne.s32.totalorder %s510_s7, %s506_s6 }
  0x17   : > { %s649_s2 = scalar_select %p64_p8, %s514_s8, %s66_s26  }
  0x18   : > { %s652_s3 = scalar_select %p38_p10, %s526_s11, %s40_s23  }
  0x19   : > { %p654_p12 = por %p77_p11, %p76_p9  ;;  %p83_p0 = scmp.eq.s32.totalorder %s271_s18, 3 }
  0x1a   : > { %p303_p1 = scmp.lt.s32.totalorder %s546_s16, 4  ;;  %s103_s5 = sand.u32 1, %s526_s11  }
  0x1b   : > { %s791_s4 = scalar_select %p654_p12, 1, 0 }
  0x1c   : > { %p664_p2 = por %p83_p0, %p82_p13  ;;  %s276_s17 = sshll.u32 %s103_s5, 4 }
  0x1d   : > { %s289_s21 = sshll.u32 %s620_s22, 8  ;;  %s107_s28 = scalar_lea.vmem [#allocation2], %s276_s17 }
  0x1e   : > { %s792_s9 = scalar_select %p664_p2, 1, 0 }
  0x1f   : > { %s672_s23 = scalar_lea.hbm %s786_s0, %s289_s21  ;;  %s117_s29 = sshll.u32 %s107_s28, 4  ;;  %s680_s29 = int_to_ptr.vmem [resolvable:$true] %s117_s29 }
  0x20   : > { %p676_p3 = pnand %p303_p1, %p630_p5  ;;  %s104_s22 = scalar_lea.sflag [#allocation3], %s103_s5 }
  0x21   : > { %s394_s30 = scalar_lea.hbm %s672_s23, 256  ;;  %s399_s21 = scalar_lea.hbm %s786_s0, 1024 }
  0x22   : > { %p395_p8 = scmp.ne.s32.totalorder %s672_s23, %s394_s30  ;;  %p396_p9 = pneg %p676_p3 }
  0x23   : > { %p400_p5 = scmp.lt.u32.totalorder %s672_s23, %s786_s0  ;;  %p401_p13 = scmp.lt.u32.totalorder %s399_s21, %s394_s30 }
  0x24   : > { %p397_p10 = pnand %p396_p9, %p395_p8  ;;  %p403_p1 = scmp.lt.u32.totalorder %s394_s30, %s672_s23 }
  0x25   : > { %p402_p0 = por %p401_p13, %p400_p5 }
  0x26   : > { %p398_p11 = pneg %p397_p10 }
  0x27   : > { %p404_p4 = por %p403_p1, %p402_p0 }
  0x29   : > { %p405_p6 = pnand %p404_p4, %p398_p11 }
  0x2b   : > { %408 = shalt.err (!%p405_p6)
}
  0x2c   : > { %s409_s5 = scalar_lea.vmem %s680_s29, 256  ;;  %s548_s28 = smov [#allocation2]  }
  0x2d   : > { %p410_p8 = scmp.ne.s32.totalorder %s680_s29, %s409_s5  ;;  %s414_s24 = sshll.u32 %s548_s28, 4  ;;  %s415_s24 = int_to_ptr.vmem [resolvable:$false] %s414_s24 }
  0x2e   : > { %s416_s17 = scalar_lea.vmem %s415_s24, 512  ;;  %p417_p12 = scmp.lt.s32.totalorder %s680_s29, %s415_s24 }
  0x2f   : > { %p412_p10 = pnand %p410_p8, %p396_p9  ;;  %p418_p5 = scmp.lt.s32.totalorder %s416_s17, %s409_s5 }
  0x31   : > { %p413_p2 = pneg %p412_p10  ;;  %p419_p13 = por %p418_p5, %p417_p12 }
  0x33   : > { %p420_p0 = pnand %p419_p13, %p413_p2 }
  0x35   : > { %423 = shalt.err (!%p420_p0)
}
  0x36   : > { %298 = dma.hbm_to_vmem [thread:$0]  (!%p676_p3), %s672_s23, 256, %s680_s29, %s104_s22  }
  0x37   : > { %p794_p4 = scmp.lt.s32.totalorder %s546_s16, 5  ;;  %p795_p6 = scmp.ge.s32.totalorder %s546_s16, 1 }
  0x39   : > { %p123_p9 = pnand %p795_p6, %p794_p4 }
  0x3a   : > { %s128_s30 = sand.u32 (!%p123_p9), 1, %s522_s10  }
  0x3b   : > { %126 = sbr.rel (%p123_p9) target bundleno = 101 (0x65), region = 24  ;;  %s281_s21 = sshll.u32 (!%p123_p9), %s128_s30, 4 }
  0x3c   : > { %s129_s26 = scalar_lea.sflag (!%p123_p9), [#allocation3], %s128_s30  ;;  %s132_s27 = scalar_lea.vmem (!%p123_p9), [#allocation2], %s281_s21 }
  0x42   : > { %497 = dma.done.wait (%p636_p7), %s129_s26, 256  }
  0x43   : > { %499 = vsyncadd (%p636_p7), %s129_s26, 4294967040  ;;  %s148_s18 = sand.u32 1, %s510_s7   ;;  %p283_p12 = scmp.ne.s32.totalorder %s530_s12, 0 }
  0x44   : > { %s282_s5 = sshll.u32 %s148_s18, 4  ;;  %v549_v0 = vmov (!%p283_p12), 0.0  }
  0x45   : > { %s150_s28 = scalar_lea.vmem [#allocation5], %s282_s5  ;;  %157 = sbr.rel (%p283_p12) target bundleno = 76 (0x4c), region = 32 }
  0x46   : > { %158 = vst [vmem:[%s150_s28] sm:$0xff] (!%p283_p12), %v549_v0  ;;  %159 = vst [vmem:[%s150_s28 + $0x8] sm:$0xff] (!%p283_p12), %v549_v0 }
  0x4c PF: > { %v160_v1 = vld [vmem:[%s132_s27] sm:$0xff]  ;;  %v161_v3 = vld [vmem:[%s132_s27 + $0x8] sm:$0xff]  ;;  %s290_s23 = sshll.u32 %s534_s13, 8  ;;  %s187_s25 = sshll.u32 %s150_s28, 4  ;;  %s726_s25 = int_to_ptr.vmem [resolvable:$true] %s187_s25 }
  0x4d   : > { %v166_v2 = vld [vmem:[%s150_s28] sm:$0xff]  ;;  %v162_v4 = vmul.f32 %v160_v1, %v160_v1  ;;  %v163_v5 = vmul.f32 %v161_v3, %v161_v3  ;;  %v167_v6 = vld [vmem:[%s150_s28 + $0x8] sm:$0xff]  ;;  %s724_s12 = scalar_lea.hbm %s787_s1, %s290_s23  ;;  %s173_s24 = scalar_lea.sflag [#allocation4], %s148_s18 }
  0x4e   : > { %s424_s13 = scalar_lea.vmem %s726_s25, 256  ;;  %p796_p2 = scmp.ne.s32.totalorder %s791_s4, 0 }
  0x4f   : > { %v168_v7 = vadd.f32 %v166_v2, %v162_v4  ;;  %v169_v8 = vadd.f32 %v167_v6, %v163_v5  ;;  %p425_p7 = scmp.ne.s32.totalorder %s726_s25, %s424_s13  ;;  %s550_s17 = smov [#allocation5]  }
  0x50   : > { %s428_s30 = sshll.u32 %s550_s17, 4  ;;  %s429_s30 = int_to_ptr.vmem [resolvable:$false] %s428_s30 }
  0x51   : > { %170 = vst [vmem:[%s150_s28] sm:$0xff] %v168_v7  ;;  %171 = vst [vmem:[%s150_s28 + $0x8] sm:$0xff] %v169_v8  ;;  %p426_p3 = pnand %p425_p7, %p796_p2  ;;  %s430_s21 = scalar_lea.vmem %s429_s30, 512 }
  0x52   : > { %p431_p1 = scmp.lt.s32.totalorder %s726_s25, %s429_s30  ;;  %p432_p8 = scmp.lt.s32.totalorder %s430_s21, %s424_s13 }
  0x53   : > { %p427_p11 = pneg %p426_p3 }
  0x54   : > { %p433_p10 = por %p432_p8, %p431_p1 }
  0x56   : > { %p434_p5 = pnand %p433_p10, %p427_p11 }
  0x58   : > { %437 = shalt.err (!%p434_p5)
}
  0x59   : > { %s438_s26 = scalar_lea.hbm %s724_s12, 256  ;;  %s442_s5 = scalar_lea.hbm %s787_s1, 512 }
  0x5a   : > { %p439_p13 = scmp.ne.s32.totalorder %s724_s12, %s438_s26  ;;  %p443_p6 = scmp.lt.u32.totalorder %s724_s12, %s787_s1 }
  0x5b   : > { %p444_p9 = scmp.lt.u32.totalorder %s442_s5, %s438_s26  ;;  %p446_p7 = scmp.lt.u32.totalorder %s438_s26, %s724_s12 }
  0x5c   : > { %p440_p0 = pnand %p439_p13, %p796_p2 }
  0x5d   : > { %p445_p12 = por %p444_p9, %p443_p6 }
  0x5e   : > { %p441_p4 = pneg %p440_p0 }
  0x5f   : > { %p447_p3 = por %p446_p7, %p445_p12 }
  0x61   : > { %p448_p11 = pnand %p447_p3, %p441_p4 }
  0x63   : > { %451 = shalt.err (!%p448_p11)
}
  0x64   : > { %293 = dma.vmem_to_hbm [thread:$0]  (%p796_p2), %s726_s25, 256, %s724_s12, %s173_s24  }
  0x65 PF: > { %p304_p1 = scmp.ge.s32.totalorder %s546_s16, 2  ;;  %s199_s29 = sand.u32 1, %s506_s6  }
  0x66   : > { %p797_p8 = scmp.ne.s32.totalorder %s792_s9, 0  ;;  %s200_s22 = scalar_lea.sflag [#allocation4], %s199_s29 }
  0x68   : > { %p300_p10 = pnand %p304_p1, %p797_p8 }
  0x6a   : > { %501 = dma.done.wait (!%p300_p10), %s200_s22, 256  }
  0x6b   : > { %503 = vsyncadd (!%p300_p10), %s200_s22, 4294967040  ;;  %s17_s16 = sadd.s32 1, %s546_s16   ;;  %s798_s6 = smov %s510_s7 }
  0x6c   : > { %p14_p5 = scmp.ge.s32.totalorder %s17_s16, 6   ;;  %s799_s7 = smov %s514_s8 }
  0x6d   : > { %s800_s8 = smov %s649_s2  ;;  %s801_s9 = smov %s522_s10 }
  0x6e   : > { %s802_s10 = smov %s526_s11  ;;  %s803_s11 = smov %s652_s3 }
  0x6f   : > { %s804_s12 = smov %s538_s14  ;;  %s805_s13 = smov %s542_s15 }
  0x70   : > { %s806_s14 = smov %s809_s19  ;;  %s807_s15 = smov %s813_s20 }
  0x71   :  { %16 = sbr.rel (!%p14_p5) target bundleno = 9 (0x9), region = 73 }
  0x78   :  { %205 = vsyncpa [#allocation3], 1 }
  0x79   :  { %207 = vsyncpa [#allocation3 + $0x1], 1 }
  0x7a   :  { %208 = vsyncpa [#allocation4], 1 }
  0x7b   :  { %210 = vsyncpa [#allocation4 + $0x1], 1 }

</bundles_post_ra>
